<compile_context>
chip_gen: v7x
topology: tpu7x:2x2x1
jax: 0.10.0
libtpu: 0.0.40
codegen_flags: <defaults>
</compile_context>

<pallas_src>
import jax
import jax.numpy as jnp
from jax import lax
from jax.experimental import pallas as pl
from jax.experimental.pallas import tpu as pltpu


def _round_up(x, m):
    return -(-x // m) * m


# ---------------------------------------------------------------------------
# Kernel
# ---------------------------------------------------------------------------
def _mlp_kernel(ui_ref, f_ref, w1ui_ref, w1f_ref, b1_ref, w2t_ref, b2_ref,
                o_ref):
    # Layer 1 (concat fused away): h = [u|i] @ w1_ui + f @ w1_f + b1, ReLU.
    # MXU accumulates in f32 regardless of the (bf16) input dtype.
    h = jnp.dot(ui_ref[...], w1ui_ref[...], preferred_element_type=jnp.float32)
    h = h + jnp.dot(f_ref[...], w1f_ref[...],
                    preferred_element_type=jnp.float32)
    h = jnp.maximum(h + b1_ref[...], 0.0)                        # (tb, H) f32

    # Layer 2, lane-dense: contract H of w2^T (1, H) with H of h (tb, H)
    # -> (1, tb): the batch lands on the lane axis (unmasked vst on writeback).
    z = lax.dot_general(w2t_ref[...], h,
                        dimension_numbers=(((1,), (1,)), ((), ())),
                        preferred_element_type=jnp.float32)       # (1, tb)
    o_ref[...] = jax.nn.sigmoid(z + b2_ref[...])


# ---------------------------------------------------------------------------
# Wrapper
# ---------------------------------------------------------------------------
_VMEM_BUDGET = 48 << 20   # conservative: v7x has 64 MiB VMEM per TensorCore


def hybrid_mlp_pallas(ui, f, w1_ui, w1_f, b1, w2_t, b2, *, tb_max=4096):
    """sigmoid(relu([u|i] @ w1_ui + f @ w1_f + b1) @ w2 + b2) -> (B,) f32."""
    assert ui.dtype == f.dtype, "activation slabs must share a dtype"
    B, twoE = ui.shape
    F = f.shape[1]
    H = b1.shape[1]

    lane, sub = 128, 8
    act_bytes = jnp.dtype(ui.dtype).itemsize
    w_bytes = jnp.dtype(w1_ui.dtype).itemsize

    # Resident weight/bias VMEM footprint (double-buffered, (8,128)-padded;
    # pessimistic estimate).
    w_vmem = 2 * ((_round_up(twoE, sub) + _round_up(F, sub))
                  * _round_up(H, lane) * w_bytes
                  + 3 * sub * _round_up(H, lane) * 4)
    # Per-batch-row VMEM cost of the streamed tiles (lane-padded) + f32 output.
    row_vmem = (_round_up(twoE, lane) + _round_up(F, lane)) * act_bytes + 4
    tb_vmem_cap = max(128, (_VMEM_BUDGET - w_vmem) // (2 * row_vmem))

    # --- batch tile selection (no jnp.pad: ragged last block is masked) -----
    tb = min(tb_max, tb_vmem_cap, B)
    if tb == B and B >= 512:
        # keep >= 2 grid steps so v7x megacore can split the batch across TCs
        tb = -(-B // 2)
    if tb < B:
        tb = max(lane, (tb // lane) * lane)   # grid > 1 -> 128-aligned blocks
        grid_b = pl.cdiv(B, tb)
    else:
        tb = B                                # single full-extent block
        grid_b = 1

    vmem_limit = (2 * (tb * row_vmem + sub * _round_up(tb, lane) * 4)
                  + w_vmem + (4 << 20))
    vmem_limit = min(64 << 20, max(32 << 20, int(vmem_limit)))

    cost = pl.CostEstimate(
        flops=2 * B * (twoE + F) * H + 2 * B * H,
        transcendentals=B,                                        # sigmoid
        bytes_accessed=(B * (twoE + F) * act_bytes + B * 4
                        + (twoE + F) * H * w_bytes + (2 * H + 1) * 4))

    out = pl.pallas_call(
        _mlp_kernel,
        out_shape=jax.ShapeDtypeStruct((1, B), jnp.float32),
        grid=(grid_b,),
        in_specs=[
            # streamed activation tiles (batch-tiled, double-buffered)
            pl.BlockSpec((tb, twoE), lambda g: (g, 0)),
            pl.BlockSpec((tb, F), lambda g: (g, 0)),
            # weights / biases: constant index maps -> VMEM-resident
            pl.BlockSpec((twoE, H), lambda g: (0, 0)),
            pl.BlockSpec((F, H), lambda g: (0, 0)),
            pl.BlockSpec((1, H), lambda g: (0, 0)),
            pl.BlockSpec((1, H), lambda g: (0, 0)),
            pl.BlockSpec((1, 1), lambda g: (0, 0)),
        ],
        # lane-dense output slab: (1, tb) block, batch on the lane axis
        out_specs=pl.BlockSpec((1, tb), lambda g: (0, g)),
        compiler_params=pltpu.CompilerParams(
            dimension_semantics=("parallel",),
            vmem_limit_bytes=vmem_limit),
        cost_estimate=cost,
    )(ui, f, w1_ui, w1_f, b1, w2_t, b2)

    return out[0]                               # (B,), matches .squeeze()


# ---------------------------------------------------------------------------
# Module-equivalent wrapper with deterministic parameters
# ---------------------------------------------------------------------------
class HybridRecommenderPallas:
    """Deterministic-parameter reimplementation of the PyTorch module."""

    def __init__(self, num_users, num_items, num_side_features,
                 embedding_dim=64, compute_dtype=jnp.bfloat16):
        key = jax.random.PRNGKey(42)
        k_ue, k_ie, k_w1, k_b1, k_w2, k_b2 = jax.random.split(key, 6)
        E = embedding_dim
        d_in = 2 * E + num_side_features
        hidden = 128
        self.compute_dtype = compute_dtype

        # nn.Embedding default init ~ N(0, 1); tables stored in the compute
        # dtype (bf16 by default) so the gather reads/writes half the bytes.
        self.user_embed = jax.random.normal(
            k_ue, (num_users, E), jnp.float32).astype(compute_dtype)
        self.item_embed = jax.random.normal(
            k_ie, (num_items, E), jnp.float32).astype(compute_dtype)

        # nn.Linear default init ~ U(-1/sqrt(fan_in), 1/sqrt(fan_in))
        lim1 = d_in ** -0.5
        w1 = jax.random.uniform(k_w1, (d_in, hidden), jnp.float32, -lim1, lim1)
        self.b1 = jax.random.uniform(k_b1, (1, hidden), jnp.float32,
                                     -lim1, lim1)
        lim2 = hidden ** -0.5
        w2 = jax.random.uniform(k_w2, (hidden, 1), jnp.float32, -lim2, lim2)
        self.b2 = jax.random.uniform(k_b2, (1, 1), jnp.float32, -lim2, lim2)

        # Pre-split w1 into the [u|i] slab and the side-feature slab so the
        # kernel fuses the concat; pre-transpose w2 for the lane-dense dot.
        self.w1_ui = w1[:2 * E].astype(compute_dtype)           # (2E, 128)
        self.w1_f = w1[2 * E:].astype(compute_dtype)            # (F, 128)
        self.w2_t = jnp.transpose(w2)                           # (1, 128) f32
        self._w1_full = w1                                      # reference only

    def __call__(self, user_ids, item_ids, item_features):
        cd = self.compute_dtype
        # Embedding gathers stay in plain JAX; XLA fuses both gathers straight
        # into the concatenated (B, 2E) slab handed to the kernel.
        # TODO(synk): a fully in-kernel gather (scalar-prefetched ids + manual
        # DMA gather from pl.ANY tables) would remove the remaining (B, 2E)
        # HBM round-trip, but for these small embedding rows it serializes
        # into per-row copies; kept outside for now.
        u = jnp.take(self.user_embed, user_ids, axis=0)          # (B, E)
        i = jnp.take(self.item_embed, item_ids, axis=0)          # (B, E)
        ui = jnp.concatenate([u, i], axis=1)                     # (B, 2E)
        f = item_features.astype(cd)                             # (B, F)
        return hybrid_mlp_pallas(ui, f, self.w1_ui, self.w1_f,
                                 self.b1, self.w2_t, self.b2)

    def reference(self, user_ids, item_ids, item_features):
        u = jnp.take(self.user_embed, user_ids, axis=0).astype(jnp.float32)
        i = jnp.take(self.item_embed, item_ids, axis=0).astype(jnp.float32)
        x = jnp.concatenate([u, i, item_features.astype(jnp.float32)], axis=1)
        h = jnp.maximum(x @ self._w1_full + self.b1, 0.0)
        return jnp.squeeze(
            jax.nn.sigmoid(h @ jnp.transpose(self.w2_t) + self.b2), axis=-1)


# ---------------------------------------------------------------------------
# Self-test
# ---------------------------------------------------------------------------
if __name__ == "__main__":
    num_users = 16
    num_items = 24
    num_side_features = 8
    embedding_dim = 32
    batch = 8

    key = jax.random.PRNGKey(0)
    k_u, k_i, k_f = jax.random.split(key, 3)
    user_ids = jax.random.randint(k_u, (batch,), 0, num_users, dtype=jnp.int32)
    item_ids = jax.random.randint(k_i, (batch,), 0, num_items, dtype=jnp.int32)
    item_features = jax.random.normal(k_f, (batch, num_side_features),
                                      dtype=jnp.float32)

    # Default bf16 compute path (bf16 tables/activations, f32 accumulation and
    # epilogue) — loose tolerance vs. the f32 reference of the same params.
    model = HybridRecommenderPallas(num_users, num_items, num_side_features,
                                    embedding_dim)
    out = jax.block_until_ready(model(user_ids, item_ids, item_features))
    ref = jax.block_until_ready(
        model.reference(user_ids, item_ids, item_features))
    assert out.shape == (batch,)
    assert jnp.allclose(out, ref, atol=2e-2, rtol=2e-2)

    # f32 path: tight tolerance.
    model_f32 = HybridRecommenderPallas(num_users, num_items,
                                        num_side_features, embedding_dim,
                                        compute_dtype=jnp.float32)
    out_f32 = jax.block_until_ready(
        model_f32(user_ids, item_ids, item_features))
    ref_f32 = jax.block_until_ready(
        model_f32.reference(user_ids, item_ids, item_features))
    assert out_f32.shape == (batch,)
    assert jnp.allclose(out_f32, ref_f32, atol=1e-5, rtol=1e-5)

    print("KERNEL_OK")
</pallas_src>

<mosaic_0001>
module attributes {stable_mosaic.version = 11 : i64} {
  func.func @_mlp_kernel(%arg0: i32, %arg1: memref<8x64xbf16, #tpu.memory_space<vmem>>, %arg2: memref<8x8xbf16, #tpu.memory_space<vmem>>, %arg3: memref<64x128xbf16, #tpu.memory_space<vmem>>, %arg4: memref<8x128xbf16, #tpu.memory_space<vmem>>, %arg5: memref<1x128xf32, #tpu.memory_space<vmem>>, %arg6: memref<1x128xf32, #tpu.memory_space<vmem>>, %arg7: memref<1x1xf32, #tpu.memory_space<vmem>>, %arg8: memref<1x8xf32, #tpu.memory_space<vmem>>) attributes {dimension_semantics = [#tpu.dimension_semantics<parallel>], iteration_bounds = array<i64: 1>, scalar_prefetch = 0 : i64, scratch_operands = 0 : i64, tpu.core_type = #tpu.core_type<tc>, window_params = [{transform_indices = @transform_0, window_bounds = array<i64: 8, 64>}, {transform_indices = @transform_1, window_bounds = array<i64: 8, 8>}, {pipeline_mode = #tpu.pipeline_mode<synchronous>, transform_indices = @transform_2, window_bounds = array<i64: 64, 128>}, {pipeline_mode = #tpu.pipeline_mode<synchronous>, transform_indices = @transform_3, window_bounds = array<i64: 8, 128>}, {pipeline_mode = #tpu.pipeline_mode<synchronous>, transform_indices = @transform_4, window_bounds = array<i64: 1, 128>}, {pipeline_mode = #tpu.pipeline_mode<synchronous>, transform_indices = @transform_5, window_bounds = array<i64: 1, 128>}, {pipeline_mode = #tpu.pipeline_mode<synchronous>, transform_indices = @transform_6, window_bounds = array<i64: 1, 1>}, {transform_indices = @transform_7, window_bounds = array<i64: 1, 8>}]} {
    %c0 = arith.constant 0 : index
    %c0_0 = arith.constant 0 : index
    %0 = vector.load %arg1[%c0, %c0_0] : memref<8x64xbf16, #tpu.memory_space<vmem>>, vector<8x64xbf16>
    %c0_1 = arith.constant 0 : index
    %c0_2 = arith.constant 0 : index
    %1 = vector.load %arg3[%c0_1, %c0_2] : memref<64x128xbf16, #tpu.memory_space<vmem>>, vector<64x128xbf16>
    %cst = arith.constant dense<0.000000e+00> : vector<8x128xf32>
    %2 = tpu.matmul %0, %1, %cst {dimension_numbers = #tpu.dot_dimension_numbers<[1], [0], [0], [1], [0, 0, 1, 1], [], []>} : vector<8x64xbf16>, vector<64x128xbf16>, vector<8x128xf32> -> vector<8x128xf32>
    %c0_3 = arith.constant 0 : index
    %c0_4 = arith.constant 0 : index
    %3 = vector.load %arg2[%c0_3, %c0_4] : memref<8x8xbf16, #tpu.memory_space<vmem>>, vector<8x8xbf16>
    %c0_5 = arith.constant 0 : index
    %c0_6 = arith.constant 0 : index
    %4 = vector.load %arg4[%c0_5, %c0_6] : memref<8x128xbf16, #tpu.memory_space<vmem>>, vector<8x128xbf16>
    %cst_7 = arith.constant dense<0.000000e+00> : vector<8x128xf32>
    %5 = tpu.matmul %3, %4, %cst_7 {dimension_numbers = #tpu.dot_dimension_numbers<[1], [0], [0], [1], [0, 0, 1, 1], [], []>} : vector<8x8xbf16>, vector<8x128xbf16>, vector<8x128xf32> -> vector<8x128xf32>
    %6 = arith.addf %2, %5 : vector<8x128xf32>
    %c0_8 = arith.constant 0 : index
    %c0_9 = arith.constant 0 : index
    %7 = vector.load %arg5[%c0_8, %c0_9] : memref<1x128xf32, #tpu.memory_space<vmem>>, vector<1x128xf32>
    %8 = vector.broadcast %7 : vector<1x128xf32> to vector<8x128xf32>
    %9 = arith.addf %6, %8 : vector<8x128xf32>
    %cst_10 = arith.constant 0.000000e+00 : f32
    %10 = vector.broadcast %cst_10 : f32 to vector<8x128xf32>
    %11 = arith.maximumf %9, %10 : vector<8x128xf32>
    %c0_11 = arith.constant 0 : index
    %c0_12 = arith.constant 0 : index
    %12 = vector.load %arg6[%c0_11, %c0_12] : memref<1x128xf32, #tpu.memory_space<vmem>>, vector<1x128xf32>
    %cst_13 = arith.constant dense<0.000000e+00> : vector<1x8xf32>
    %13 = tpu.matmul %12, %11, %cst_13 {dimension_numbers = #tpu.dot_dimension_numbers<[1], [1], [0], [0], [0, 0, 1, 0], [], []>} : vector<1x128xf32>, vector<8x128xf32>, vector<1x8xf32> -> vector<1x8xf32>
    %c0_14 = arith.constant 0 : index
    %c0_15 = arith.constant 0 : index
    %14 = vector.load %arg7[%c0_14, %c0_15] : memref<1x1xf32, #tpu.memory_space<vmem>>, vector<1x1xf32>
    %15 = vector.broadcast %14 : vector<1x1xf32> to vector<1x8xf32>
    %16 = arith.addf %13, %15 : vector<1x8xf32>
    %17 = arith.negf %16 : vector<1x8xf32>
    %18 = math.exp %17 : vector<1x8xf32>
    %cst_16 = arith.constant 1.000000e+00 : f32
    %19 = vector.broadcast %cst_16 : f32 to vector<1x8xf32>
    %20 = arith.addf %19, %18 : vector<1x8xf32>
    %21 = arith.divf %19, %20 : vector<1x8xf32>
    %c0_17 = arith.constant 0 : index
    %c0_18 = arith.constant 0 : index
    %22 = vector.load %arg8[%c0_17, %c0_18] : memref<1x8xf32, #tpu.memory_space<vmem>>, vector<1x8xf32>
    tpu.vector_store %arg8[%c0_17, %c0_18], %21 {strides = array<i32>} : memref<1x8xf32, #tpu.memory_space<vmem>>, vector<1x8xf32>,
    return
  }
  func.func @transform_0(%arg0: i32) -> (i32, i32) {
    %c0_i32 = arith.constant 0 : i32
    %c0_i32_0 = arith.constant 0 : i32
    return %arg0, %c0_i32 : i32, i32
  }
  func.func @transform_1(%arg0: i32) -> (i32, i32) {
    %c0_i32 = arith.constant 0 : i32
    %c0_i32_0 = arith.constant 0 : i32
    return %arg0, %c0_i32 : i32, i32
  }
  func.func @transform_2(%arg0: i32) -> (i32, i32) {
    %c0_i32 = arith.constant 0 : i32
    %c0_i32_0 = arith.constant 0 : i32
    %c0_i32_1 = arith.constant 0 : i32
    return %c0_i32, %c0_i32_0 : i32, i32
  }
  func.func @transform_3(%arg0: i32) -> (i32, i32) {
    %c0_i32 = arith.constant 0 : i32
    %c0_i32_0 = arith.constant 0 : i32
    %c0_i32_1 = arith.constant 0 : i32
    return %c0_i32, %c0_i32_0 : i32, i32
  }
  func.func @transform_4(%arg0: i32) -> (i32, i32) {
    %c0_i32 = arith.constant 0 : i32
    %c0_i32_0 = arith.constant 0 : i32
    %c0_i32_1 = arith.constant 0 : i32
    return %c0_i32, %c0_i32_0 : i32, i32
  }
  func.func @transform_5(%arg0: i32) -> (i32, i32) {
    %c0_i32 = arith.constant 0 : i32
    %c0_i32_0 = arith.constant 0 : i32
    %c0_i32_1 = arith.constant 0 : i32
    return %c0_i32, %c0_i32_0 : i32, i32
  }
  func.func @transform_6(%arg0: i32) -> (i32, i32) {
    %c0_i32 = arith.constant 0 : i32
    %c0_i32_0 = arith.constant 0 : i32
    %c0_i32_1 = arith.constant 0 : i32
    return %c0_i32, %c0_i32_0 : i32, i32
  }
  func.func @transform_7(%arg0: i32) -> (i32, i32) {
    %c0_i32 = arith.constant 0 : i32
    %c0_i32_0 = arith.constant 0 : i32
    return %c0_i32, %arg0 : i32, i32
  }
}

</mosaic_0001>

<bundles_post_ra>
// kernel: tpu_custom_call.1
= control target key start
LH: loop header
LB: loop body
LE: loop exit
PB: predicated region body
PF: predicated region fallthrough
CT: control target
= control target key end

     0   :  { %s535_s0 = inlined_call_operand.hbm [shape: bf16[8,64], index: 0, kind: input, shape index: {}]   ;;  %s536_s1 = inlined_call_operand.vmem [shape: bf16[8,8], index: 1, kind: input, shape index: {}]   ;;  %s537_s2 = inlined_call_operand.hbm [shape: bf16[64,128], index: 2, kind: input, shape index: {}]   ;;  %s538_s3 = inlined_call_operand.vmem [shape: bf16[8,128], index: 3, kind: input, shape index: {}]   ;;  %s539_s4 = inlined_call_operand.vmem [shape: f32[1,128], index: 4, kind: input, shape index: {}]   ;;  %s540_s5 = inlined_call_operand.vmem [shape: f32[1,128], index: 5, kind: input, shape index: {}]   ;;  %s541_s6 = inlined_call_operand.<no memory space> [shape: f32[1,1], index: 6, kind: input, shape index: {}]   ;;  %s542_s7 = inlined_call_operand.hbm [shape: f32[1,8], index: 7, kind: output, shape index: {}]  }
   0x1   :  { %v12_v0 = vstv %s541_s6 }
   0x2   :  { %13 = vst [vmem:[#allocation2] sm:$0x1] %v12_v0 }
   0x3   :  { %14 = vsyncpa [#allocation4], 0 }
   0x4   :  { %15 = vsyncpa [#allocation7], 0 }
   0x5   :  { %16 = vsyncpa [#allocation5], 0  ;;  %s426_s26 = smov [#allocation3]   ;;  %s427_s28 = smov [#allocation6]  }
   0x6   :  { %s23_s27 = sshll.u32 %s426_s26, 4  ;;  %s34_s29 = sshll.u32 %s427_s28, 4  ;;  %s24_s27 = int_to_ptr.vmem [resolvable:$true] %s23_s27  ;;  %s477_s29 = int_to_ptr.vmem [resolvable:$true] %s34_s29 }
   0x7   :  { %s354_s9 = scalar_lea.hbm %s535_s0, 64 }
   0x8   :  { %p355_p0 = scmp.ne.s32.totalorder %s535_s0, %s354_s9  ;;  %p358_p1 = scmp.lt.u32.totalorder %s354_s9, %s535_s0 }
   0xa   :  { %p360_p2 = pnand %p358_p1, %p355_p0 }
   0xc   :  { %363 = shalt.err (!%p360_p2)
}
   0xd   :  { %s364_s13 = scalar_lea.vmem %s24_s27, 64  ;;  %p369_p4 = scmp.lt.s32.totalorder %s24_s27, %s24_s27 }
   0xe   :  { %p365_p3 = scmp.ne.s32.totalorder %s24_s27, %s364_s13  ;;  %p370_p5 = scmp.lt.s32.totalorder %s364_s13, %s364_s13 }
  0x10   :  { %p371_p6 = por %p370_p5, %p369_p4 }
  0x12   :  { %p372_p7 = pnand %p371_p6, %p365_p3 }
  0x14   :  { %375 = shalt.err (!%p372_p7)
}
  0x15   :  { %26 = dma.hbm_to_vmem [thread:$0]  %s535_s0, 64, %s24_s27, [#allocation4]  }
  0x16   :  { %s376_s18 = scalar_lea.hbm %s537_s2, 512 }
  0x17   :  { %p377_p8 = scmp.ne.s32.totalorder %s537_s2, %s376_s18  ;;  %p380_p9 = scmp.lt.u32.totalorder %s376_s18, %s537_s2 }
  0x19   :  { %p382_p10 = pnand %p380_p9, %p377_p8 }
  0x1b   :  { %385 = shalt.err (!%p382_p10)
}
  0x1c   :  { %s386_s23 = scalar_lea.vmem %s477_s29, 512  ;;  %p391_p12 = scmp.lt.s32.totalorder %s477_s29, %s477_s29 }
  0x1d   :  { %p387_p11 = scmp.ne.s32.totalorder %s477_s29, %s386_s23  ;;  %p392_p13 = scmp.lt.s32.totalorder %s386_s23, %s386_s23 }
  0x1f   :  { %p393_p0 = por %p392_p13, %p391_p12 }
  0x21   :  { %p394_p1 = pnand %p393_p0, %p387_p11 }
  0x23   :  { %397 = shalt.err (!%p394_p1)
}
  0x24   :  { %s428_s0 = smov 64   ;;  %s429_s24 = smov 4  }
  0x25   :  { %40 = dma.hbm_to_vmem [thread:$0]  %s537_s2, 512, %s477_s29, [#allocation7], %s428_s0, %s428_s0, %s429_s24  }
  0x26   :  { %420 = dma.done.wait [#allocation4], 64  }
  0x27   :  { %421 = vsyncadd [#allocation4], 4294967232 }
  0x28   :  { %422 = dma.done.wait [#allocation7], 512  }
  0x29   :  { %423 = vsyncadd [#allocation7], 4294966784  ;;  %v430_v1 = vmov 0.0   ;;  %vm431_vm0 = vmmov 0   ;;  %v346_v2 = vld [vmem:[#allocation6] sm:$0xff]   ;;  %vm71_vm1 = vcmask 1043456   ;;  %v199_v25 = vlaneseq }
  0x2a   :  { %320 = vmatprep.subr.bf16.mxu1 %v430_v1  ;;  %314 = vmatprep.subr.bf16.mxu0 %v430_v1  ;;  %v347_v3 = vld [vmem:[#allocation6 + $0x8] sm:$0xff]   ;;  %v66_v4 = vld [vmem:[%s538_s3] sm:$0xf]  ;;  %vm67_vm2 = vcmask 64512   ;;  %v348_v7 = vld [vmem:[#allocation6 + $0x10] sm:$0xff]   ;;  %vm139_vm3 = vcmask 523264  }
  0x2b   :  { %316 = vmatprep.mubr.msk.bf16.mxu0 %vm431_vm0, %v430_v1  ;;  %328 = vmatprep.mubr.msk.bf16.mxu1 %vm431_vm0, %v430_v1  ;;  %v73_v5 = vsel %vm71_vm1, %v66_v4, 0  ;;  %v65_v6 = vld [vmem:[%s536_s1] sm:$0xf]  ;;  %v432_v11 = vmov 0   ;;  %v200_v26 = vshrl.u32 %v199_v25, 7  ;;  %vm279_vm4 = vcmask 57344  }
  0x2c   :  { %321 = vmatpush3.bf16.msra.mxu1 %v346_v2  ;;  %315 = vmatpush3.bf16.msra.mxu0 %v73_v5  ;;  %v349_v8 = vld [vmem:[#allocation6 + $0x18] sm:$0xff]  }
  0x2d   :  { %322 = vmatprep.subr.bf16.mxu1 %v430_v1  ;;  %332 = vmatprep.subr.mxu0 %v430_v1  ;;  %v56_v9 = vld [vmem:[#allocation3] sm:$0xf]  ;;  %v193_v10 = vld [vmem:[#allocation2] sm:$0x1]  ;;  %v201_v27 = vsub.s32 0, %v200_v26 }
  0x2e   :  { %345 = vset.pattern.permute.xlu0 %v432_v11  ;;  %v303_v17 = vld [vmem:[%s539_s4] ss:$0 sm:$0xff]  ;;  %s433_s4 = smov [#allocation8]  }
  0x2f   :  { %317 = vmatmul.mubr.msk.bf16.vlgmr.msra.gmra.mrb[0].mxu0 %vm67_vm2, %v65_v6  ;;  %196 = vperm.xlu0 %345, %v193_v10   ;;  %v192_v24 = vld [vmem:[%s540_s5] sm:$0x1]  ;;  %s287_s9 = sshll.u32 %s433_s4, 4  ;;  %s288_s9 = int_to_ptr.vmem [resolvable:$true] %s287_s9 }
  0x30   :  { %323 = vmatpush3.bf16.msra.mxu1 %v347_v3  ;;  %334 = vmatprep.mubr.msk.f32.mxu0 %vm431_vm0, %v430_v1  ;;  %s398_s5 = scalar_lea.vmem %s288_s9, 16  ;;  %s402_s10 = scalar_lea.vmem %s288_s9, 32 }
  0x31   :  { %324 = vmatprep.subr.bf16.mxu1 %v430_v1  ;;  %p399_p2 = scmp.ne.s32.totalorder %s288_s9, %s398_s5  ;;  %p403_p3 = scmp.lt.s32.totalorder %s288_s9, %s288_s9 }
  0x32   :  { %p404_p4 = scmp.lt.s32.totalorder %s402_s10, %s398_s5 }
  0x34   :  { %325 = vmatpush3.bf16.msra.mxu1 %v348_v7  ;;  %p405_p5 = por %p404_p4, %p403_p3 }
  0x35   :  { %326 = vmatprep.subr.bf16.mxu1 %v430_v1 }
  0x36   :  { %p406_p6 = pnand %p405_p5, %p399_p2 }
  0x38   :  { %327 = vmatpush3.bf16.msra.mxu1 %v349_v8 }
  0x3b   :  { %329 = vmatmul.mubr.msk.bf16.vlgmr.msra.gmra.mrb[0].mxu1 %vm139_vm3, %v56_v9 }
  0xae   :  { %v197_v28 = vpop.permute.xlu0 %196 }
  0xaf   :  { %v202_v29 = vrot.slane %v197_v28, %v201_v27 }
 0x102   :  { %v109_v12 = vpop.f32.mrb[0].mxu0 }
 0x103   :  { %v318_v13 = vpop.f32.mrb[1].mxu0 }
 0x104   :  { %v112_v14 = vpop.f32.mrb[2].mxu0 }
 0x105   :  { %v319_v15 = vpop.f32.mrb[3].mxu0 }
 0x10e   :  { %v177_v16 = vpop.f32.mrb[0].mxu1 }
 0x10f   :  { %v178_v18 = vadd.f32 %v177_v16, %v109_v12  ;;  %v330_v19 = vpop.f32.mrb[1].mxu1 }
 0x110   :  { %v180_v20 = vpop.f32.mrb[2].mxu1 }
 0x111   :  { %v190_v21 = vadd.f32 %v303_v17, %v178_v18  ;;  %v331_v22 = vpop.f32.mrb[3].mxu1 }
 0x113   :  { %v191_v23 = vmax.f32 %v190_v21, 0.0 }
 0x115   :  { %333 = vmatpush3.xpose.msra.mxu0 %v191_v23 }
 0x118   :  { %335 = vmatmul.mubr.f32.vlgmr.msra.gmra.mrb[4].mxu0 %v192_v24 }
 0x1eb   :  { %v269_v30 = vpop.f32.mrb[4].mxu0 }
 0x1ec   :  { %v270_v31 = vadd.f32 %v269_v30, %v202_v29  ;;  %v336_v32 = vpop.f32.mrb[5].mxu0 }
 0x1ee   :  { %v304_v33 = vmul.f32 -1.442695, %v270_v31 }
 0x1f0   :  { %350 = vpow2.f32 %v304_v33 }
 0x1fa   :  { %v351_v34 = vpop.eup %350 }
 0x1fb   :  { %v276_v35 = vadd.f32 1.0, %v351_v34 }
 0x1fd   :  { %352 = vrcp.f32 %v276_v35 }
 0x207   :  { %v353_v36 = vpop.eup %352 }
 0x208   :  { %280 = vst.msk [vmem:[#allocation8] sm:$0x1] %vm279_vm4, %v353_v36 }
 0x209   :  { %409 = shalt.err (!%p406_p6)
}
 0x20a   :  { %s410_s12 = scalar_lea.hbm %s542_s7, 16 }
 0x20b   :  { %p411_p7 = scmp.ne.s32.totalorder %s542_s7, %s410_s12  ;;  %p414_p8 = scmp.lt.u32.totalorder %s410_s12, %s542_s7 }
 0x20d   :  { %p416_p9 = pnand %p414_p8, %p411_p7 }
 0x20f   :  { %419 = shalt.err (!%p416_p9)
}
 0x210   :  { %290 = dma.vmem_to_hbm [thread:$0]  %s288_s9, 16, %s542_s7, [#allocation5]  }
 0x211   :  { %424 = dma.done.wait [#allocation5], 16  }
 0x212   :  { %425 = vsyncadd [#allocation5], 4294967280 }
 0x213   :  { %294 = vsyncpa [#allocation4], 1 }
 0x214   :  { %295 = vsyncpa [#allocation7], 1 }
 0x215   :  { %296 = vsyncpa [#allocation5], 1 }

</bundles_post_ra>
